<compile_context>
chip_gen: v7x
topology: tpu7x:2x2x1
jax: 0.10.0
libtpu: 0.0.40
codegen_flags: <defaults>
</compile_context>

<pallas_src>
import jax
import jax.numpy as jnp
from jax import lax
from jax.experimental import pallas as pl
from jax.experimental.pallas import tpu as pltpu


# --------------------------------------------------------------------------- #
# Kernel 1: batch-independent classifier build (C-tiled, parallel grid).
# --------------------------------------------------------------------------- #
def _classifier_build_kernel(emb_ref, v1t_ref, g1_ref, b1_ref,
                             v2t_ref, g2_ref, b2_ref, cls_ref):
    # weight_norm scale as a lane-resident (1, F) row via a sublane-axis reduce
    # (XLU slot; keeps the MXU matmul below off the reduce+rsqrt dependency chain).
    v1t = v1t_ref[...]                                            # (E_pad, F_pad)
    ss1 = jnp.sum(v1t * v1t, axis=0, keepdims=True)               # (1, F_pad)
    # Guard only fires for all-zero (padded) columns; PyTorch weight_norm would
    # give NaN for a genuinely zero weight row.  The guard is load-bearing: it
    # keeps NaN out of the zero-padded F columns.
    s1 = g1_ref[...] * jnp.where(ss1 > 0, lax.rsqrt(ss1), 0.0)    # (1, F_pad)

    # descriptor tile = LeakyReLU((emb @ v1.T) * s1 + b1, 0.1)
    h = jnp.dot(emb_ref[...], v1t, preferred_element_type=jnp.float32)  # (TC, F)
    h = h * s1 + b1_ref[...]
    desc = jnp.where(h > 0, h, 0.1 * h)                           # LeakyReLU(0.1)
    # Dropout(p=0.7) -> identity in eval mode.
    # TODO(synk): training-mode dropout (random masking) is not reproduced.

    v2t = v2t_ref[...]                                            # (F_pad, F_pad)
    ss2 = jnp.sum(v2t * v2t, axis=0, keepdims=True)               # (1, F_pad)
    s2 = g2_ref[...] * jnp.where(ss2 > 0, lax.rsqrt(ss2), 0.0)    # (1, F_pad)

    cls = jnp.dot(desc, v2t, preferred_element_type=jnp.float32)  # (TC, F_pad)
    cls_ref[...] = (cls * s2 + b2_ref[...]).astype(cls_ref.dtype)


# --------------------------------------------------------------------------- #
# Kernel 2: logits = x @ classifier.T  (batch-tiled, parallel grid).
# --------------------------------------------------------------------------- #
def _logits_kernel(x_ref, cls_ref, out_ref):
    out = lax.dot_general(x_ref[...], cls_ref[...],
                          (((1,), (1,)), ((), ())),               # contract over F
                          preferred_element_type=jnp.float32)     # (TB, C_pad)
    out_ref[...] = out.astype(out_ref.dtype)


# --------------------------------------------------------------------------- #
# Wrapper.
# --------------------------------------------------------------------------- #
def _round_up(n, m):
    return ((n + m - 1) // m) * m


def _pad2d(a, rows, cols):
    pr, pc = rows - a.shape[0], cols - a.shape[1]
    if pr == 0 and pc == 0:
        return a
    return jnp.pad(a, ((0, pr), (0, pc)))


def semantic_classifier(x, embedding, v1, g1, b1, v2, g2, b2):
    """Eval-mode forward of SemanticClassifier.

    x: (B, F), embedding: (C, E), v1: (F, E), g1: (F, 1), b1: (1, F),
    v2: (F, F), g2: (F, 1), b2: (1, F)  ->  logits (B, C) f32.
    """
    B, F = x.shape
    C, E = embedding.shape

    # vreg-dense padding: lane dims -> x128, sublane dims -> x8.
    E_pad = _round_up(E, 128)
    F_pad = _round_up(F, 128)

    # Class tile for the classifier-build kernel (parallel grid over classes).
    C_pad = _round_up(C, 128)
    TC = min(C_pad, 512)
    C_pad = _round_up(C_pad, TC)
    grid_c = C_pad // TC

    # Batch tile for the logits kernel.
    TB = min(_round_up(B, 8), 512)
    B_pad = _round_up(B, TB)
    grid_b = B_pad // TB

    # Pad / pre-transpose operands (trace-time XLA work, once per call).
    x_p = _pad2d(x, B_pad, F_pad)
    emb_p = _pad2d(embedding, C_pad, E_pad)
    v1t_p = _pad2d(v1.T, E_pad, F_pad)              # K-major direction matrix
    v2t_p = _pad2d(v2.T, F_pad, F_pad)
    g1_p = _pad2d(g1.T, 1, F_pad)                   # lane-resident (1, F) gains
    g2_p = _pad2d(g2.T, 1, F_pad)
    b1_p = _pad2d(b1, 1, F_pad)
    b2_p = _pad2d(b2, 1, F_pad)

    whole = lambda i: (0, 0)

    # ---------------- classifier build (one-shot, batch independent) ---------
    cost_cls = pl.CostEstimate(
        flops=grid_c * (2 * TC * F_pad * (E_pad + F_pad))
              + grid_c * 2 * (F_pad * E_pad + F_pad * F_pad),
        transcendentals=grid_c * 2 * F_pad,
        bytes_accessed=4 * (emb_p.size + v1t_p.size + v2t_p.size
                            + 4 * F_pad + C_pad * F_pad),
    )
    cls = pl.pallas_call(
        _classifier_build_kernel,
        out_shape=jax.ShapeDtypeStruct((C_pad, F_pad), jnp.float32),
        grid=(grid_c,),
        in_specs=[
            pl.BlockSpec((TC, F_pad if E_pad == F_pad else E_pad),
                         lambda i: (i, 0)) if False else
            pl.BlockSpec((TC, E_pad), lambda i: (i, 0)),   # embedding (C-tiled)
            pl.BlockSpec((E_pad, F_pad), whole),           # v1.T
            pl.BlockSpec((1, F_pad), whole),               # g1 row
            pl.BlockSpec((1, F_pad), whole),               # b1
            pl.BlockSpec((F_pad, F_pad), whole),           # v2.T
            pl.BlockSpec((1, F_pad), whole),               # g2 row
            pl.BlockSpec((1, F_pad), whole),               # b2
        ],
        out_specs=pl.BlockSpec((TC, F_pad), lambda i: (i, 0)),
        compiler_params=pltpu.CompilerParams(
            dimension_semantics=("parallel",)),
        cost_estimate=cost_cls,
    )(emb_p, v1t_p, g1_p, b1_p, v2t_p, g2_p, b2_p)

    # ---------------- logits = x @ classifier.T (batch-tiled GEMM) -----------
    # TODO(synk): for very large num_classes on v7x (64 MiB VMEM), tile the C axis
    # of `cls`/`out` with a second grid dimension instead of the whole-array block.
    cost_out = pl.CostEstimate(
        flops=2 * B_pad * F_pad * C_pad,
        transcendentals=0,
        bytes_accessed=4 * (B_pad * F_pad + grid_b * C_pad * F_pad
                            + B_pad * C_pad),
    )
    out_p = pl.pallas_call(
        _logits_kernel,
        out_shape=jax.ShapeDtypeStruct((B_pad, C_pad), jnp.float32),
        grid=(grid_b,),
        in_specs=[
            pl.BlockSpec((TB, F_pad), lambda i: (i, 0)),   # x (batch-tiled)
            pl.BlockSpec((C_pad, F_pad), whole),           # classifier (resident)
        ],
        out_specs=pl.BlockSpec((TB, C_pad), lambda i: (i, 0)),
        compiler_params=pltpu.CompilerParams(
            dimension_semantics=("parallel",)),
        cost_estimate=cost_out,
    )(x_p, cls)

    return out_p[:B, :C]


# --------------------------------------------------------------------------- #
# Pure-JAX reference.
# --------------------------------------------------------------------------- #
def _reference(x, embedding, v1, g1, b1, v2, g2, b2):
    w1 = v1 * (g1 / jnp.sqrt(jnp.sum(v1 * v1, axis=1, keepdims=True)))
    h = embedding @ w1.T + b1
    desc = jnp.where(h > 0, h, 0.1 * h)
    w2 = v2 * (g2 / jnp.sqrt(jnp.sum(v2 * v2, axis=1, keepdims=True)))
    classifier = desc @ w2.T + b2
    return x @ classifier.T


if __name__ == "__main__":
    # Small shapes consistent with the module.
    B = 4            # batch
    E = 32           # embedding_dims
    F = 32           # feat_dims
    C = 16           # num_classes

    key = jax.random.PRNGKey(0)
    k_x, k_emb, k_v1, k_g1, k_b1, k_v2, k_g2, k_b2 = jax.random.split(key, 8)

    x = jax.random.normal(k_x, (B, F), dtype=jnp.float32)
    embedding = jax.random.normal(k_emb, (C, E), dtype=jnp.float32)

    # weight_norm(Linear(E, F), dim=0): raw direction v1 (F, E) and gain g1 (F, 1)
    v1 = jax.random.normal(k_v1, (F, E), dtype=jnp.float32) * 0.1
    g1 = jax.random.uniform(k_g1, (F, 1), dtype=jnp.float32, minval=0.5, maxval=1.5)
    b1 = jax.random.normal(k_b1, (1, F), dtype=jnp.float32) * 0.1

    # weight_norm(Linear(F, F), dim=0)
    v2 = jax.random.normal(k_v2, (F, F), dtype=jnp.float32) * 0.1
    g2 = jax.random.uniform(k_g2, (F, 1), dtype=jnp.float32, minval=0.5, maxval=1.5)
    b2 = jax.random.normal(k_b2, (1, F), dtype=jnp.float32) * 0.1

    out = semantic_classifier(x, embedding, v1, g1, b1, v2, g2, b2)
    out = jax.block_until_ready(out)

    ref = _reference(x, embedding, v1, g1, b1, v2, g2, b2)
    assert out.shape == (B, C), out.shape
    assert jnp.allclose(out, ref, atol=1e-4, rtol=1e-4), float(jnp.max(jnp.abs(out - ref)))

    print("KERNEL_OK")
</pallas_src>

<mosaic_0001>
module attributes {stable_mosaic.version = 11 : i64} {
  func.func @_classifier_build_kernel(%arg0: i32, %arg1: memref<128x128xf32, #tpu.memory_space<vmem>>, %arg2: memref<128x128xf32, #tpu.memory_space<vmem>>, %arg3: memref<1x128xf32, #tpu.memory_space<vmem>>, %arg4: memref<1x128xf32, #tpu.memory_space<vmem>>, %arg5: memref<128x128xf32, #tpu.memory_space<vmem>>, %arg6: memref<1x128xf32, #tpu.memory_space<vmem>>, %arg7: memref<1x128xf32, #tpu.memory_space<vmem>>, %arg8: memref<128x128xf32, #tpu.memory_space<vmem>>) attributes {dimension_semantics = [#tpu.dimension_semantics<parallel>], iteration_bounds = array<i64: 1>, scalar_prefetch = 0 : i64, scratch_operands = 0 : i64, tpu.core_type = #tpu.core_type<tc>, window_params = [{transform_indices = @transform_0, window_bounds = array<i64: 128, 128>}, {pipeline_mode = #tpu.pipeline_mode<synchronous>, transform_indices = @transform_1, window_bounds = array<i64: 128, 128>}, {pipeline_mode = #tpu.pipeline_mode<synchronous>, transform_indices = @transform_2, window_bounds = array<i64: 1, 128>}, {pipeline_mode = #tpu.pipeline_mode<synchronous>, transform_indices = @transform_3, window_bounds = array<i64: 1, 128>}, {pipeline_mode = #tpu.pipeline_mode<synchronous>, transform_indices = @transform_4, window_bounds = array<i64: 128, 128>}, {pipeline_mode = #tpu.pipeline_mode<synchronous>, transform_indices = @transform_5, window_bounds = array<i64: 1, 128>}, {pipeline_mode = #tpu.pipeline_mode<synchronous>, transform_indices = @transform_6, window_bounds = array<i64: 1, 128>}, {transform_indices = @transform_7, window_bounds = array<i64: 128, 128>}]} {
    %c0 = arith.constant 0 : index
    %c0_0 = arith.constant 0 : index
    %0 = vector.load %arg2[%c0, %c0_0] : memref<128x128xf32, #tpu.memory_space<vmem>>, vector<128x128xf32>
    %1 = arith.mulf %0, %0 : vector<128x128xf32>
    %cst = arith.constant dense<0.000000e+00> : vector<128xf32>
    %2 = vector.multi_reduction <add>, %1, %cst [0] : vector<128x128xf32> to vector<128xf32>
    %3 = vector.shape_cast %2 : vector<128xf32> to vector<1x128xf32>
    %c0_1 = arith.constant 0 : index
    %c0_2 = arith.constant 0 : index
    %4 = vector.load %arg3[%c0_1, %c0_2] : memref<1x128xf32, #tpu.memory_space<vmem>>, vector<1x128xf32>
    %cst_3 = arith.constant 0.000000e+00 : f32
    %5 = vector.broadcast %cst_3 : f32 to vector<1x128xf32>
    %6 = arith.cmpf ogt, %3, %5 : vector<1x128xf32>
    %7 = math.rsqrt %3 : vector<1x128xf32>
    %cst_4 = arith.constant 0.000000e+00 : f32
    %8 = vector.broadcast %cst_4 : f32 to vector<1x128xf32>
    %9 = arith.select %6, %7, %8 : vector<1x128xi1>, vector<1x128xf32>
    %10 = arith.mulf %4, %9 : vector<1x128xf32>
    %c0_5 = arith.constant 0 : index
    %c0_6 = arith.constant 0 : index
    %11 = vector.load %arg1[%c0_5, %c0_6] : memref<128x128xf32, #tpu.memory_space<vmem>>, vector<128x128xf32>
    %cst_7 = arith.constant dense<0.000000e+00> : vector<128x128xf32>
    %12 = tpu.matmul %11, %0, %cst_7 {dimension_numbers = #tpu.dot_dimension_numbers<[1], [0], [0], [1], [0, 0, 1, 1], [], []>} : vector<128x128xf32>, vector<128x128xf32>, vector<128x128xf32> -> vector<128x128xf32>
    %13 = vector.broadcast %10 : vector<1x128xf32> to vector<128x128xf32>
    %14 = arith.mulf %12, %13 : vector<128x128xf32>
    %c0_8 = arith.constant 0 : index
    %c0_9 = arith.constant 0 : index
    %15 = vector.load %arg4[%c0_8, %c0_9] : memref<1x128xf32, #tpu.memory_space<vmem>>, vector<1x128xf32>
    %16 = vector.broadcast %15 : vector<1x128xf32> to vector<128x128xf32>
    %17 = arith.addf %14, %16 : vector<128x128xf32>
    %cst_10 = arith.constant 0.000000e+00 : f32
    %18 = vector.broadcast %cst_10 : f32 to vector<128x128xf32>
    %19 = arith.cmpf ogt, %17, %18 : vector<128x128xf32>
    %cst_11 = arith.constant 1.000000e-01 : f32
    %20 = vector.broadcast %cst_11 : f32 to vector<128x128xf32>
    %21 = arith.mulf %20, %17 : vector<128x128xf32>
    %22 = arith.select %19, %17, %21 : vector<128x128xi1>, vector<128x128xf32>
    %c0_12 = arith.constant 0 : index
    %c0_13 = arith.constant 0 : index
    %23 = vector.load %arg5[%c0_12, %c0_13] : memref<128x128xf32, #tpu.memory_space<vmem>>, vector<128x128xf32>
    %24 = arith.mulf %23, %23 : vector<128x128xf32>
    %cst_14 = arith.constant dense<0.000000e+00> : vector<128xf32>
    %25 = vector.multi_reduction <add>, %24, %cst_14 [0] : vector<128x128xf32> to vector<128xf32>
    %26 = vector.shape_cast %25 : vector<128xf32> to vector<1x128xf32>
    %c0_15 = arith.constant 0 : index
    %c0_16 = arith.constant 0 : index
    %27 = vector.load %arg6[%c0_15, %c0_16] : memref<1x128xf32, #tpu.memory_space<vmem>>, vector<1x128xf32>
    %cst_17 = arith.constant 0.000000e+00 : f32
    %28 = vector.broadcast %cst_17 : f32 to vector<1x128xf32>
    %29 = arith.cmpf ogt, %26, %28 : vector<1x128xf32>
    %30 = math.rsqrt %26 : vector<1x128xf32>
    %cst_18 = arith.constant 0.000000e+00 : f32
    %31 = vector.broadcast %cst_18 : f32 to vector<1x128xf32>
    %32 = arith.select %29, %30, %31 : vector<1x128xi1>, vector<1x128xf32>
    %33 = arith.mulf %27, %32 : vector<1x128xf32>
    %cst_19 = arith.constant dense<0.000000e+00> : vector<128x128xf32>
    %34 = tpu.matmul %22, %23, %cst_19 {dimension_numbers = #tpu.dot_dimension_numbers<[1], [0], [0], [1], [0, 0, 1, 1], [], []>} : vector<128x128xf32>, vector<128x128xf32>, vector<128x128xf32> -> vector<128x128xf32>
    %35 = vector.broadcast %33 : vector<1x128xf32> to vector<128x128xf32>
    %36 = arith.mulf %34, %35 : vector<128x128xf32>
    %c0_20 = arith.constant 0 : index
    %c0_21 = arith.constant 0 : index
    %37 = vector.load %arg7[%c0_20, %c0_21] : memref<1x128xf32, #tpu.memory_space<vmem>>, vector<1x128xf32>
    %38 = vector.broadcast %37 : vector<1x128xf32> to vector<128x128xf32>
    %39 = arith.addf %36, %38 : vector<128x128xf32>
    %c0_22 = arith.constant 0 : index
    %c0_23 = arith.constant 0 : index
    %40 = vector.load %arg8[%c0_22, %c0_23] : memref<128x128xf32, #tpu.memory_space<vmem>>, vector<128x128xf32>
    tpu.vector_store %arg8[%c0_22, %c0_23], %39 {strides = array<i32>} : memref<128x128xf32, #tpu.memory_space<vmem>>, vector<128x128xf32>,
    return
  }
  func.func @transform_0(%arg0: i32) -> (i32, i32) {
    %c0_i32 = arith.constant 0 : i32
    %c0_i32_0 = arith.constant 0 : i32
    return %arg0, %c0_i32 : i32, i32
  }
  func.func @transform_1(%arg0: i32) -> (i32, i32) {
    %c0_i32 = arith.constant 0 : i32
    %c0_i32_0 = arith.constant 0 : i32
    %c0_i32_1 = arith.constant 0 : i32
    return %c0_i32, %c0_i32_0 : i32, i32
  }
  func.func @transform_2(%arg0: i32) -> (i32, i32) {
    %c0_i32 = arith.constant 0 : i32
    %c0_i32_0 = arith.constant 0 : i32
    %c0_i32_1 = arith.constant 0 : i32
    return %c0_i32, %c0_i32_0 : i32, i32
  }
  func.func @transform_3(%arg0: i32) -> (i32, i32) {
    %c0_i32 = arith.constant 0 : i32
    %c0_i32_0 = arith.constant 0 : i32
    %c0_i32_1 = arith.constant 0 : i32
    return %c0_i32, %c0_i32_0 : i32, i32
  }
  func.func @transform_4(%arg0: i32) -> (i32, i32) {
    %c0_i32 = arith.constant 0 : i32
    %c0_i32_0 = arith.constant 0 : i32
    %c0_i32_1 = arith.constant 0 : i32
    return %c0_i32, %c0_i32_0 : i32, i32
  }
  func.func @transform_5(%arg0: i32) -> (i32, i32) {
    %c0_i32 = arith.constant 0 : i32
    %c0_i32_0 = arith.constant 0 : i32
    %c0_i32_1 = arith.constant 0 : i32
    return %c0_i32, %c0_i32_0 : i32, i32
  }
  func.func @transform_6(%arg0: i32) -> (i32, i32) {
    %c0_i32 = arith.constant 0 : i32
    %c0_i32_0 = arith.constant 0 : i32
    %c0_i32_1 = arith.constant 0 : i32
    return %c0_i32, %c0_i32_0 : i32, i32
  }
  func.func @transform_7(%arg0: i32) -> (i32, i32) {
    %c0_i32 = arith.constant 0 : i32
    %c0_i32_0 = arith.constant 0 : i32
    return %arg0, %c0_i32 : i32, i32
  }
}

</mosaic_0001>

<bundles_post_ra>
// kernel: tpu_custom_call.1
= control target key start
LH: loop header
LB: loop body
LE: loop exit
PB: predicated region body
PF: predicated region fallthrough
CT: control target
= control target key end

     0   :  { %12 = vsyncpa [#allocation3], 0  ;;  %s1216_s0 = inlined_call_operand.hbm [shape: f32[128,128], index: 0, kind: input, shape index: {}]   ;;  %s1217_s1 = inlined_call_operand.hbm [shape: f32[128,128], index: 1, kind: input, shape index: {}]   ;;  %s1218_s2 = inlined_call_operand.vmem [shape: f32[1,128], index: 2, kind: input, shape index: {}]   ;;  %s1219_s3 = inlined_call_operand.vmem [shape: f32[1,128], index: 3, kind: input, shape index: {}]   ;;  %s1220_s4 = inlined_call_operand.hbm [shape: f32[128,128], index: 4, kind: input, shape index: {}]   ;;  %s1221_s5 = inlined_call_operand.vmem [shape: f32[1,128], index: 5, kind: input, shape index: {}]   ;;  %s1222_s6 = inlined_call_operand.vmem [shape: f32[1,128], index: 6, kind: input, shape index: {}]   ;;  %s1223_s7 = inlined_call_operand.hbm [shape: f32[128,128], index: 7, kind: output, shape index: {}]  }
   0x1   :  { %13 = vsyncpa [#allocation6], 0 }
   0x2   :  { %14 = vsyncpa [#allocation4], 0  ;;  %s1008_s24 = smov [#allocation5]   ;;  %s1009_s26 = smov [#allocation2]  }
   0x3   :  { %s32_s25 = sshll.u32 %s1008_s24, 4  ;;  %s20_s27 = sshll.u32 %s1009_s26, 4  ;;  %s33_s25 = int_to_ptr.vmem [resolvable:$true] %s32_s25  ;;  %s1054_s27 = int_to_ptr.vmem [resolvable:$true] %s20_s27 }
   0x4   :  { %s914_s30 = scalar_lea.hbm %s1217_s1, 2048 }
   0x5   :  { %p915_p0 = scmp.ne.s32.totalorder %s1217_s1, %s914_s30  ;;  %p918_p1 = scmp.lt.u32.totalorder %s914_s30, %s1217_s1 }
   0x7   :  { %p920_p2 = pnand %p918_p1, %p915_p0 }
   0x9   :  { %923 = shalt.err (!%p920_p2)
}
   0xa   :  { %s924_s12 = scalar_lea.vmem %s33_s25, 2048  ;;  %p929_p4 = scmp.lt.s32.totalorder %s33_s25, %s33_s25 }
   0xb   :  { %p925_p3 = scmp.ne.s32.totalorder %s33_s25, %s924_s12  ;;  %p930_p5 = scmp.lt.s32.totalorder %s924_s12, %s924_s12 }
   0xd   :  { %p931_p6 = por %p930_p5, %p929_p4 }
   0xf   :  { %p932_p7 = pnand %p931_p6, %p925_p3 }
  0x11   :  { %935 = shalt.err (!%p932_p7)
}
  0x12   :  { %s1010_s13 = smov 128   ;;  %s1011_s14 = smov 8  }
  0x13   :  { %38 = dma.hbm_to_vmem [thread:$0]  %s1217_s1, 2048, %s33_s25, [#allocation6], %s1010_s13, %s1010_s13, %s1011_s14  }
  0x14   :  { %s936_s19 = scalar_lea.hbm %s1216_s0, 2048 }
  0x15   :  { %p937_p8 = scmp.ne.s32.totalorder %s1216_s0, %s936_s19  ;;  %p940_p9 = scmp.lt.u32.totalorder %s936_s19, %s1216_s0 }
  0x17   :  { %p942_p10 = pnand %p940_p9, %p937_p8 }
  0x19   :  { %945 = shalt.err (!%p942_p10)
}
  0x1a   :  { %s946_s24 = scalar_lea.vmem %s1054_s27, 2048  ;;  %p951_p12 = scmp.lt.s32.totalorder %s1054_s27, %s1054_s27 }
  0x1b   :  { %p947_p11 = scmp.ne.s32.totalorder %s1054_s27, %s946_s24  ;;  %p952_p13 = scmp.lt.s32.totalorder %s946_s24, %s946_s24 }
  0x1d   :  { %p953_p0 = por %p952_p13, %p951_p12 }
  0x1f   :  { %p954_p1 = pnand %p953_p0, %p947_p11 }
  0x21   :  { %957 = shalt.err (!%p954_p1)
}
  0x22   :  { %26 = dma.hbm_to_vmem [thread:$0]  %s1216_s0, 2048, %s1054_s27, [#allocation3], %s1010_s13, %s1010_s13, %s1011_s14  }
  0x23   :  { %s1012_s26 = smov [#allocation7]   ;;  %s958_s8 = scalar_lea.hbm %s1220_s4, 2048 }
  0x24   :  { %s48_s28 = sshll.u32 %s1012_s26, 4  ;;  %p959_p2 = scmp.ne.s32.totalorder %s1220_s4, %s958_s8  ;;  %s49_s28 = int_to_ptr.vmem [resolvable:$true] %s48_s28 }
  0x25   :  { %p962_p3 = scmp.lt.u32.totalorder %s958_s8, %s1220_s4 }
  0x27   :  { %p964_p4 = pnand %p962_p3, %p959_p2 }
  0x29   :  { %967 = shalt.err (!%p964_p4)
}
  0x2a   :  { %s968_s15 = scalar_lea.vmem %s49_s28, 2048  ;;  %p973_p6 = scmp.lt.s32.totalorder %s49_s28, %s49_s28 }
  0x2b   :  { %p969_p5 = scmp.ne.s32.totalorder %s49_s28, %s968_s15  ;;  %p974_p7 = scmp.lt.s32.totalorder %s968_s15, %s968_s15 }
  0x2d   :  { %p975_p8 = por %p974_p7, %p973_p6 }
  0x2f   :  { %p976_p9 = pnand %p975_p8, %p969_p5 }
  0x31   :  { %979 = shalt.err (!%p976_p9)
}
  0x32   :  { %54 = dma.hbm_to_vmem [thread:$0]  %s1220_s4, 2048, %s49_s28, [#allocation6], %s1010_s13, %s1010_s13, %s1011_s14  }
  0x33   :  { %1002 = dma.done.wait [#allocation3], 2048  }
  0x34   :  { %1003 = vsyncadd [#allocation3], 4294965248 }
  0x35   :  { %1004 = dma.done.wait [#allocation6], 4096  }
  0x36   :  { %1005 = vsyncadd [#allocation6], 4294963200  ;;  %v68_v0 = vld [vmem:[#allocation5] sm:$0xff]  ;;  %v69_v1 = vld [vmem:[#allocation5 + $0x8] sm:$0xff] }
  0x37   :  { %v70_v2 = vld [vmem:[#allocation5 + $0x10] sm:$0xff]  ;;  %v84_v3 = vmul.f32 %v68_v0, %v68_v0  ;;  %v85_v4 = vmul.f32 %v69_v1, %v69_v1  ;;  %v840_v5 = vpack.c.bf16 %v69_v1, %v68_v0  ;;  %v71_v6 = vld [vmem:[#allocation5 + $0x18] sm:$0xff]  ;;  %v72_v9 = vld [vmem:[#allocation5 + $0x20] sm:$0xff] }
  0x38   :  { %v86_v7 = vmul.f32 %v70_v2, %v70_v2  ;;  %v844_v8 = vpack.c.bf16 %v71_v6, %v70_v2  ;;  %v73_v10 = vld [vmem:[#allocation5 + $0x28] sm:$0xff]  ;;  %v87_v12 = vmul.f32 %v71_v6, %v71_v6  ;;  %v88_v14 = vmul.f32 %v72_v9, %v72_v9  ;;  %v126_v16 = vld [vmem:[#allocation2] sm:$0xff]  ;;  %v74_v17 = vld [vmem:[#allocation5 + $0x30] sm:$0xff] }
  0x39   :  { %v100_v11 = vadd.f32 %v85_v4, %v84_v3  ;;  %841 = vmatprep.subr.bf16.mxu0 %v840_v5  ;;  %v848_v15 = vpack.c.bf16 %v73_v10, %v72_v9  ;;  %v75_v18 = vld [vmem:[#allocation5 + $0x38] sm:$0xff]  ;;  %760 = vmatprep.mubr.f32.mxu0 %v126_v16  ;;  %v89_v20 = vmul.f32 %v73_v10, %v73_v10  ;;  %v76_v24 = vld [vmem:[#allocation5 + $0x40] sm:$0xff]  ;;  %v77_v25 = vld [vmem:[#allocation5 + $0x48] sm:$0xff] }
  0x3a   :  { %843 = vmatpush3.bf16.msra.mxu0 %v840_v5  ;;  %v90_v22 = vmul.f32 %v74_v17, %v74_v17  ;;  %v852_v23 = vpack.c.bf16 %v75_v18, %v74_v17  ;;  %v91_v27 = vmul.f32 %v75_v18, %v75_v18  ;;  %v380_v28 = vld [vmem:[#allocation7] sm:$0xff]  ;;  %v381_v29 = vld [vmem:[#allocation7 + $0x8] sm:$0xff]  ;;  %v382_v30 = vld [vmem:[#allocation7 + $0x10] sm:$0xff]  ;;  %v92_v37 = vmul.f32 %v76_v24, %v76_v24 }
  0x3b   :  { %v101_v13 = vadd.f32 %v100_v11, %v86_v7  ;;  %845 = vmatprep.subr.bf16.mxu0 %v844_v8  ;;  %v396_v31 = vmul.f32 %v380_v28, %v380_v28  ;;  %v397_v32 = vmul.f32 %v381_v29, %v381_v29  ;;  %v872_v33 = vpack.c.bf16 %v381_v29, %v380_v28  ;;  %v383_v34 = vld [vmem:[#allocation7 + $0x18] sm:$0xff]  ;;  %v384_v40 = vld [vmem:[#allocation7 + $0x20] sm:$0xff]  ;;  %v385_v41 = vld [vmem:[#allocation7 + $0x28] sm:$0xff] }
  0x3c   :  { %v398_v35 = vmul.f32 %v382_v30, %v382_v30  ;;  %v856_v38 = vpack.c.bf16 %v77_v25, %v76_v24  ;;  %v876_v39 = vpack.c.bf16 %v383_v34, %v382_v30  ;;  %v78_v42 = vld [vmem:[#allocation5 + $0x50] sm:$0xff]  ;;  %v79_v43 = vld [vmem:[#allocation5 + $0x58] sm:$0xff]  ;;  %v399_v45 = vmul.f32 %v383_v34, %v383_v34  ;;  %v80_v56 = vld [vmem:[#allocation5 + $0x60] sm:$0xff] }
  0x3d   :  { %v102_v19 = vadd.f32 %v101_v13, %v87_v12  ;;  %v412_v44 = vadd.f32 %v397_v32, %v396_v31  ;;  %873 = vmatprep.subr.bf16.mxu1 %v872_v33  ;;  %v93_v47 = vmul.f32 %v77_v25, %v77_v25  ;;  %v400_v49 = vmul.f32 %v384_v40, %v384_v40  ;;  %v386_v54 = vld [vmem:[#allocation7 + $0x30] sm:$0xff]  ;;  %v387_v55 = vld [vmem:[#allocation7 + $0x38] sm:$0xff]  ;;  %v81_v57 = vld [vmem:[#allocation5 + $0x68] sm:$0xff] }
  0x3e   :  { %847 = vmatpush3.bf16.msra.mxu0 %v844_v8  ;;  %875 = vmatpush3.bf16.msra.mxu1 %v872_v33  ;;  %v880_v50 = vpack.c.bf16 %v385_v41, %v384_v40  ;;  %v94_v52 = vmul.f32 %v78_v42, %v78_v42  ;;  %v860_v53 = vpack.c.bf16 %v79_v43, %v78_v42  ;;  %v388_v4 = vld [vmem:[#allocation7 + $0x40] sm:$0xff]  ;;  %v389_v5 = vld [vmem:[#allocation7 + $0x48] sm:$0xff]  ;;  %v82_v6 = vld [vmem:[#allocation5 + $0x70] sm:$0xff] }
  0x3f   :  { %v103_v21 = vadd.f32 %v102_v19, %v88_v14  ;;  %849 = vmatprep.subr.bf16.mxu0 %v848_v15  ;;  %v413_v48 = vadd.f32 %v412_v44, %v398_v35  ;;  %877 = vmatprep.subr.bf16.mxu1 %v876_v39  ;;  %v401_v59 = vmul.f32 %v385_v41, %v385_v41  ;;  %v83_v7 = vld [vmem:[#allocation5 + $0x78] sm:$0xff]  ;;  %v390_v18 = vld [vmem:[#allocation7 + $0x50] sm:$0xff]  ;;  %v127_v31 = vld [vmem:[#allocation2 + $0x8] sm:$0xff] }
  0x40   :  { %v95_v61 = vmul.f32 %v79_v43, %v79_v43  ;;  %v402_v63 = vmul.f32 %v386_v54, %v386_v54  ;;  %v884_v0 = vpack.c.bf16 %v387_v55, %v386_v54  ;;  %v96_v2 = vmul.f32 %v80_v56, %v80_v56  ;;  %v391_v19 = vld [vmem:[#allocation7 + $0x58] sm:$0xff]  ;;  %v128_v33 = vld [vmem:[#allocation2 + $0x10] sm:$0xff]  ;;  %v134_v40 = vld [vmem:[#allocation2 + $0x40] sm:$0xff] }
  0x41   :  { %v104_v26 = vadd.f32 %v103_v21, %v89_v20  ;;  %v414_v58 = vadd.f32 %v413_v48, %v399_v45  ;;  %v864_v3 = vpack.c.bf16 %v81_v57, %v80_v56  ;;  %v403_v9 = vmul.f32 %v387_v55, %v387_v55  ;;  %v129_v35 = vld [vmem:[#allocation2 + $0x18] sm:$0xff]  ;;  %v135_v41 = vld [vmem:[#allocation2 + $0x48] sm:$0xff]  ;;  %v136_v42 = vld [vmem:[#allocation2 + $0x50] sm:$0xff] }
  0x42   :  { %851 = vmatpush3.bf16.msra.mxu0 %v848_v15  ;;  %879 = vmatpush3.bf16.msra.mxu1 %v876_v39  ;;  %v97_v11 = vmul.f32 %v81_v57, %v81_v57  ;;  %v404_v13 = vmul.f32 %v388_v4, %v388_v4  ;;  %v888_v14 = vpack.c.bf16 %v389_v5, %v388_v4  ;;  %v133_v39 = vld [vmem:[#allocation2 + $0x38] sm:$0xff]  ;;  %v138_v44 = vld [vmem:[#allocation2 + $0x60] sm:$0xff]  ;;  %v139_v45 = vld [vmem:[#allocation2 + $0x68] sm:$0xff]  ;;  %v288_v4 = vlaneseq }
  0x43   :  { %v105_v36 = vadd.f32 %v104_v26, %v90_v22  ;;  %853 = vmatprep.subr.bf16.mxu0 %v852_v23  ;;  %v415_v62 = vadd.f32 %v414_v58, %v400_v49  ;;  %881 = vmatprep.subr.bf16.mxu1 %v880_v50  ;;  %v98_v16 = vmul.f32 %v82_v6, %v82_v6  ;;  %v137_v43 = vld [vmem:[#allocation2 + $0x58] sm:$0xff]  ;;  %v392_v48 = vld [vmem:[#allocation7 + $0x60] sm:$0xff]  ;;  %v393_v49 = vld [vmem:[#allocation7 + $0x68] sm:$0xff] }
  0x44   :  { %v868_v17 = vpack.c.bf16 %v83_v7, %v82_v6  ;;  %v405_v21 = vmul.f32 %v389_v5, %v389_v5  ;;  %v406_v25 = vmul.f32 %v390_v18, %v390_v18  ;;  %v892_v26 = vpack.c.bf16 %v391_v19, %v390_v18 }
  0x45   :  { %v106_v46 = vadd.f32 %v105_v36, %v91_v27  ;;  %v416_v8 = vadd.f32 %v415_v62, %v401_v59  ;;  %v407_v29 = vmul.f32 %v391_v19, %v391_v19  ;;  %v130_v36 = vld [vmem:[#allocation2 + $0x20] sm:$0xff]  ;;  %v409_v54 = vmul.f32 %v393_v49, %v393_v49 }
  0x46   :  { %855 = vmatpush3.bf16.msra.mxu0 %v852_v23  ;;  %883 = vmatpush3.bf16.msra.mxu1 %v880_v50  ;;  %v99_v23 = vmul.f32 %v83_v7, %v83_v7  ;;  %v896_v50 = vpack.c.bf16 %v393_v49, %v392_v48  ;;  %v1108_v6 = vshrl.u32 %v288_v4, 7  ;;  %v121_v7 = vld [vmem:[%s1218_s2] sm:$0x1] }
  0x47   :  { %v107_v51 = vadd.f32 %v106_v46, %v92_v37  ;;  %857 = vmatprep.subr.bf16.mxu0 %v856_v38  ;;  %v417_v12 = vadd.f32 %v416_v8, %v402_v63  ;;  %885 = vmatprep.subr.bf16.mxu1 %v884_v0  ;;  %v131_v37 = vld [vmem:[#allocation2 + $0x28] sm:$0xff]  ;;  %v140_v46 = vld [vmem:[#allocation2 + $0x70] sm:$0xff] }
  0x49   :  { %v108_v60 = vadd.f32 %v107_v51, %v93_v47  ;;  %v418_v20 = vadd.f32 %v417_v12, %v403_v9  ;;  %v141_v47 = vld [vmem:[#allocation2 + $0x78] sm:$0xff]  ;;  %v394_v51 = vld [vmem:[#allocation7 + $0x70] sm:$0xff] }
  0x4a   :  { %859 = vmatpush3.bf16.msra.mxu0 %v856_v38  ;;  %887 = vmatpush3.bf16.msra.mxu1 %v884_v0  ;;  %v132_v38 = vld [vmem:[#allocation2 + $0x30] sm:$0xff]  ;;  %v410_v58 = vmul.f32 %v394_v51, %v394_v51 }
  0x4b   :  { %v109_v1 = vadd.f32 %v108_v60, %v94_v52  ;;  %861 = vmatprep.subr.bf16.mxu0 %v860_v53  ;;  %v419_v24 = vadd.f32 %v418_v20, %v404_v13  ;;  %889 = vmatprep.subr.bf16.mxu1 %v888_v14  ;;  %v395_v52 = vld [vmem:[#allocation7 + $0x78] sm:$0xff]  ;;  %v1121_v13 = vld [vmem:[%s1219_s3] ss:$0 sm:$0xff] }
  0x4c   :  { %v900_v55 = vpack.c.bf16 %v395_v52, %v394_v51  ;;  %v411_v59 = vmul.f32 %v395_v52, %v395_v52 }
  0x4d   :  { %v110_v10 = vadd.f32 %v109_v1, %v95_v61  ;;  %v420_v28 = vadd.f32 %v419_v24, %v405_v21 }
  0x4e   :  { %863 = vmatpush3.bf16.msra.mxu0 %v860_v53  ;;  %891 = vmatpush3.bf16.msra.mxu1 %v888_v14  ;;  %v408_v53 = vmul.f32 %v392_v48, %v392_v48 }
  0x4f   :  { %v111_v15 = vadd.f32 %v110_v10, %v96_v2  ;;  %865 = vmatprep.subr.bf16.mxu0 %v864_v3  ;;  %v421_v32 = vadd.f32 %v420_v28, %v406_v25  ;;  %893 = vmatprep.subr.bf16.mxu1 %v892_v26  ;;  %v290_v10 = vsub.s32 0, %v1108_v6 }
  0x51   :  { %v112_v22 = vadd.f32 %v111_v15, %v97_v11  ;;  %v422_v34 = vadd.f32 %v421_v32, %v407_v29 }
  0x52   :  { %867 = vmatpush3.bf16.msra.mxu0 %v864_v3  ;;  %895 = vmatpush3.bf16.msra.mxu1 %v892_v26 }
  0x53   :  { %v113_v27 = vadd.f32 %v112_v22, %v98_v16  ;;  %869 = vmatprep.subr.bf16.mxu0 %v868_v17  ;;  %897 = vmatprep.subr.bf16.mxu1 %v896_v50  ;;  %v423_v56 = vadd.f32 %v422_v34, %v408_v53 }
  0x55   :  { %v114_v30 = vadd.f32 %v113_v27, %v99_v23  ;;  %v424_v57 = vadd.f32 %v423_v56, %v409_v54 }
  0x56   :  { %871 = vmatpush3.bf16.msra.mxu0 %v868_v17  ;;  %899 = vmatpush3.bf16.msra.mxu1 %v896_v50 }
  0x57   :  { %901 = vmatprep.subr.bf16.mxu1 %v900_v55  ;;  %v425_v60 = vadd.f32 %v424_v57, %v410_v58  ;;  %v115_v62 = vrot.slane %v114_v30, 4 }
  0x59   :  { %761 = vmatmul.mubr.f32.vlgmr.msra.gmra.mrb[0].mxu0 %v127_v31  ;;  %v1106_v61 = vadd.f32 %v425_v60, %v411_v59  ;;  %v116_v63 = vadd.f32 %v115_v62, %v114_v30 }
  0x5a   :  { %763 = vmatprep.mubr.f32.mxu0 %v128_v33  ;;  %903 = vmatpush3.bf16.msra.mxu1 %v900_v55 }
  0x5b   :  { %v117_v0 = vrot.slane %v116_v63, 2 }
  0x5d   :  { %764 = vmatmul.mubr.f32.gmra.mrb[2].mxu0 %v129_v35  ;;  %v118_v1 = vadd.f32 %v117_v0, %v116_v63 }
  0x5e   :  { %766 = vmatprep.mubr.f32.mxu0 %v130_v36 }
  0x5f   :  { %v119_v2 = vrot.slane %v118_v1, 1 }
  0x61   :  { %767 = vmatmul.mubr.f32.gmra.mrb[4].mxu0 %v131_v37  ;;  %v120_v3 = vadd.f32 %v119_v2, %v118_v1 }
  0x62   :  { %769 = vmatprep.mubr.f32.mxu0 %v132_v38 }
  0x63   :  { %910 = vrsqrt.f32 %v120_v3  ;;  %vm122_vm0 = vcmp.gt.f32.partialorder %v120_v3, 0.0 }
  0x65   :  { %770 = vmatmul.mubr.f32.gmra.mrb[6].mxu0 %v133_v39 }
  0x66   :  { %772 = vmatprep.mubr.f32.mxu0 %v134_v40 }
  0x69   :  { %773 = vmatmul.mubr.f32.gmra.mrb[8].mxu0 %v135_v41 }
  0x6a   :  { %775 = vmatprep.mubr.f32.mxu0 %v136_v42 }
  0x6d   :  { %776 = vmatmul.mubr.f32.gmra.mrb[10].mxu0 %v137_v43  ;;  %v911_v5 = vpop.eup %910 }
  0x6e   :  { %778 = vmatprep.mubr.f32.mxu0 %v138_v44  ;;  %v124_v8 = vsel %vm122_vm0, %v911_v5, 0.0 }
  0x6f   :  { %v125_v9 = vmul.f32 %v124_v8, %v121_v7 }
  0x71   :  { %779 = vmatmul.mubr.f32.gmra.mrb[12].mxu0 %v139_v45  ;;  %v1116_v11 = vrot.slane %v125_v9, %v290_v10 }
  0x72   :  { %781 = vmatprep.mubr.f32.mxu0 %v140_v46 }
  0x75   :  { %782 = vmatmul.mubr.f32.gmra.mrb[14].mxu0 %v141_v47 }
 0x12c   :  { %v762_v12 = vpop.f32.mrb[0].mxu0 }
 0x12d   :  { %v294_v14 = vmul.f32 %v762_v12, %v1116_v11  ;;  %v208_v15 = vpop.f32.mrb[1].mxu0 }
 0x12e   :  { %v293_v16 = vmul.f32 %v1116_v11, %v208_v15 }
 0x12f   :  { %v317_v17 = vadd.f32 %v1121_v13, %v294_v14 }
 0x130   :  { %v316_v18 = vadd.f32 %v1121_v13, %v293_v16  ;;  %v765_v19 = vpop.f32.mrb[2].mxu0 }
 0x131   :  { %v296_v20 = vmul.f32 %v765_v19, %v1116_v11  ;;  %v218_v21 = vpop.f32.mrb[3].mxu0  ;;  %v349_v22 = vmul.f32 0.1, %v317_v17  ;;  %vm333_vm2 = vcmp.gt.f32.partialorder %v317_v17, 0.0 }
 0x132   :  { %v295_v23 = vmul.f32 %v1116_v11, %v218_v21  ;;  %vm332_vm1 = vcmp.gt.f32.partialorder %v316_v18, 0.0  ;;  %v348_v24 = vmul.f32 0.1, %v316_v18 }
 0x133   :  { %v319_v25 = vadd.f32 %v1121_v13, %v296_v20  ;;  %v365_v31 = vsel %vm333_vm2, %v317_v17, %v349_v22 }
 0x134   :  { %v318_v26 = vadd.f32 %v1121_v13, %v295_v23  ;;  %v768_v27 = vpop.f32.mrb[4].mxu0  ;;  %v364_v28 = vsel %vm332_vm1, %v316_v18, %v348_v24 }
 0x135   :  { %v298_v29 = vmul.f32 %v768_v27, %v1116_v11  ;;  %v228_v30 = vpop.f32.mrb[5].mxu0  ;;  %816 = vmatprep.mubr.f32.mxu1 %v364_v28  ;;  %v351_v32 = vmul.f32 0.1, %v319_v25  ;;  %vm335_vm4 = vcmp.gt.f32.partialorder %v319_v25, 0.0 }
 0x136   :  { %v297_v33 = vmul.f32 %v1116_v11, %v228_v30  ;;  %817 = vmatmul.mubr.f32.vlgmr.msra.gmra.mrb[0].mxu1 %v365_v31  ;;  %vm334_vm3 = vcmp.gt.f32.partialorder %v318_v26, 0.0  ;;  %v350_v34 = vmul.f32 0.1, %v318_v26 }
 0x137   :  { %v321_v35 = vadd.f32 %v1121_v13, %v298_v29  ;;  %v367_v41 = vsel %vm335_vm4, %v319_v25, %v351_v32 }
 0x138   :  { %v320_v36 = vadd.f32 %v1121_v13, %v297_v33  ;;  %v771_v37 = vpop.f32.mrb[6].mxu0  ;;  %v366_v38 = vsel %vm334_vm3, %v318_v26, %v350_v34 }
 0x139   :  { %v300_v39 = vmul.f32 %v771_v37, %v1116_v11  ;;  %v238_v40 = vpop.f32.mrb[7].mxu0  ;;  %819 = vmatprep.mubr.f32.mxu1 %v366_v38  ;;  %v353_v42 = vmul.f32 0.1, %v321_v35  ;;  %vm337_vm6 = vcmp.gt.f32.partialorder %v321_v35, 0.0 }
 0x13a   :  { %v299_v43 = vmul.f32 %v1116_v11, %v238_v40  ;;  %820 = vmatmul.mubr.f32.gmra.mrb[2].mxu1 %v367_v41  ;;  %vm336_vm5 = vcmp.gt.f32.partialorder %v320_v36, 0.0  ;;  %v352_v44 = vmul.f32 0.1, %v320_v36 }
 0x13b   :  { %v323_v45 = vadd.f32 %v1121_v13, %v300_v39  ;;  %v369_v51 = vsel %vm337_vm6, %v321_v35, %v353_v42  ;;  %v433_v39 = vld [vmem:[%s1221_s5] sm:$0x1]  ;;  %s1013_s5 = smov [#allocation8]  }
 0x13c   :  { %v322_v46 = vadd.f32 %v1121_v13, %v299_v43  ;;  %v774_v47 = vpop.f32.mrb[8].mxu0  ;;  %v368_v48 = vsel %vm336_vm5, %v320_v36, %v352_v44 }
 0x13d   :  { %v302_v49 = vmul.f32 %v774_v47, %v1116_v11  ;;  %v248_v50 = vpop.f32.mrb[9].mxu0  ;;  %822 = vmatprep.mubr.f32.mxu1 %v368_v48  ;;  %v355_v52 = vmul.f32 0.1, %v323_v45  ;;  %vm339_vm8 = vcmp.gt.f32.partialorder %v323_v45, 0.0 }
 0x13e   :  { %v301_v53 = vmul.f32 %v1116_v11, %v248_v50  ;;  %823 = vmatmul.mubr.f32.gmra.mrb[4].mxu1 %v369_v51  ;;  %vm338_vm7 = vcmp.gt.f32.partialorder %v322_v46, 0.0  ;;  %v354_v54 = vmul.f32 0.1, %v322_v46 }
 0x13f   :  { %v325_v55 = vadd.f32 %v1121_v13, %v302_v49  ;;  %v371_v62 = vsel %vm339_vm8, %v323_v45, %v355_v52 }
 0x140   :  { %v324_v56 = vadd.f32 %v1121_v13, %v301_v53  ;;  %v777_v57 = vpop.f32.mrb[10].mxu0  ;;  %v370_v58 = vsel %vm338_vm7, %v322_v46, %v354_v54 }
 0x141   :  { %v304_v59 = vmul.f32 %v777_v57, %v1116_v11  ;;  %v258_v60 = vpop.f32.mrb[11].mxu0  ;;  %825 = vmatprep.mubr.f32.mxu1 %v370_v58  ;;  %v357_v63 = vmul.f32 0.1, %v325_v55  ;;  %vm341_vm10 = vcmp.gt.f32.partialorder %v325_v55, 0.0 }
 0x142   :  { %v303_v0 = vmul.f32 %v1116_v11, %v258_v60  ;;  %826 = vmatmul.mubr.f32.gmra.mrb[6].mxu1 %v371_v62  ;;  %vm340_vm9 = vcmp.gt.f32.partialorder %v324_v56, 0.0  ;;  %v356_v1 = vmul.f32 0.1, %v324_v56 }
 0x143   :  { %v327_v2 = vadd.f32 %v1121_v13, %v304_v59  ;;  %v373_v9 = vsel %vm341_vm10, %v325_v55, %v357_v63 }
 0x144   :  { %v326_v3 = vadd.f32 %v1121_v13, %v303_v0  ;;  %v780_v4 = vpop.f32.mrb[12].mxu0  ;;  %v372_v5 = vsel %vm340_vm9, %v324_v56, %v356_v1 }
 0x145   :  { %v306_v7 = vmul.f32 %v780_v4, %v1116_v11  ;;  %v268_v8 = vpop.f32.mrb[13].mxu0  ;;  %828 = vmatprep.mubr.f32.mxu1 %v372_v5  ;;  %v359_v12 = vmul.f32 0.1, %v327_v2  ;;  %vm343_vm12 = vcmp.gt.f32.partialorder %v327_v2, 0.0 }
 0x146   :  { %v305_v14 = vmul.f32 %v1116_v11, %v268_v8  ;;  %829 = vmatmul.mubr.f32.gmra.mrb[8].mxu1 %v373_v9  ;;  %vm342_vm11 = vcmp.gt.f32.partialorder %v326_v3, 0.0  ;;  %v358_v15 = vmul.f32 0.1, %v326_v3 }
 0x147   :  { %v329_v16 = vadd.f32 %v1121_v13, %v306_v7  ;;  %v375_v22 = vsel %vm343_vm12, %v327_v2, %v359_v12 }
 0x148   :  { %v328_v17 = vadd.f32 %v1121_v13, %v305_v14  ;;  %v783_v18 = vpop.f32.mrb[14].mxu0  ;;  %v374_v19 = vsel %vm342_vm11, %v326_v3, %v358_v15 }
 0x149   :  { %v308_v20 = vmul.f32 %v783_v18, %v1116_v11  ;;  %v278_v21 = vpop.f32.mrb[15].mxu0  ;;  %831 = vmatprep.mubr.f32.mxu1 %v374_v19  ;;  %v361_v23 = vmul.f32 0.1, %v329_v16  ;;  %vm345_vm14 = vcmp.gt.f32.partialorder %v329_v16, 0.0 }
 0x14a   :  { %v307_v24 = vmul.f32 %v1116_v11, %v278_v21  ;;  %832 = vmatmul.mubr.f32.gmra.mrb[10].mxu1 %v375_v22  ;;  %vm344_vm13 = vcmp.gt.f32.partialorder %v328_v17, 0.0  ;;  %v360_v25 = vmul.f32 0.1, %v328_v17  ;;  %v427_v11 = vrot.slane %v1106_v61, 4 }
 0x14b   :  { %v331_v26 = vadd.f32 %v1121_v13, %v308_v20  ;;  %v377_v29 = vsel %vm345_vm14, %v329_v16, %v361_v23 }
 0x14c   :  { %v330_v27 = vadd.f32 %v1121_v13, %v307_v24  ;;  %v376_v28 = vsel %vm344_vm13, %v328_v17, %v360_v25  ;;  %v428_v34 = vadd.f32 %v427_v11, %v1106_v61  ;;  %v1167_v61 = vld [vmem:[%s1222_s6] ss:$0 sm:$0xff]  ;;  %s649_s6 = sshll.u32 %s1013_s5, 4  ;;  %s650_s6 = int_to_ptr.vmem [resolvable:$true] %s649_s6 }
 0x14d   :  { %834 = vmatprep.mubr.f32.mxu1 %v376_v28  ;;  %v363_v30 = vmul.f32 0.1, %v331_v26  ;;  %vm347_vm0 = vcmp.gt.f32.partialorder %v331_v26, 0.0  ;;  %s980_s21 = scalar_lea.vmem %s650_s6, 2048  ;;  %p985_p11 = scmp.lt.s32.totalorder %s650_s6, %s650_s6 }
 0x14e   :  { %835 = vmatmul.mubr.f32.gmra.mrb[12].mxu1 %v377_v29  ;;  %vm346_vm15 = vcmp.gt.f32.partialorder %v330_v27, 0.0  ;;  %v362_v31 = vmul.f32 0.1, %v330_v27  ;;  %v429_v35 = vrot.slane %v428_v34, 2  ;;  %p981_p10 = scmp.ne.s32.totalorder %s650_s6, %s980_s21  ;;  %p986_p12 = scmp.lt.s32.totalorder %s980_s21, %s980_s21 }
 0x14f   :  { %v379_v33 = vsel %vm347_vm0, %v331_v26, %v363_v30 }
 0x150   :  { %v378_v32 = vsel %vm346_vm15, %v330_v27, %v362_v31  ;;  %v430_v36 = vadd.f32 %v429_v35, %v428_v34  ;;  %p987_p13 = por %p986_p12, %p985_p11 }
 0x151   :  { %837 = vmatprep.mubr.f32.mxu1 %v378_v32 }
 0x152   :  { %838 = vmatmul.mubr.f32.gmra.mrb[14].mxu1 %v379_v33  ;;  %v431_v37 = vrot.slane %v430_v36, 1  ;;  %p988_p0 = pnand %p987_p13, %p981_p10 }
 0x154   :  { %v432_v13 = vadd.f32 %v431_v37, %v430_v36 }
 0x156   :  { %912 = vrsqrt.f32 %v432_v13  ;;  %vm434_vm1 = vcmp.gt.f32.partialorder %v432_v13, 0.0 }
 0x160   :  { %v913_v38 = vpop.eup %912 }
 0x161   :  { %v436_v40 = vsel %vm434_vm1, %v913_v38, 0.0 }
 0x162   :  { %v437_v41 = vmul.f32 %v436_v40, %v433_v39 }
 0x164   :  { %v1162_v42 = vrot.slane %v437_v41, %v290_v10 }
 0x209   :  { %v818_v43 = vpop.f32.mrb[0].mxu1 }
 0x20a   :  { %v590_v44 = vmul.f32 %v818_v43, %v1162_v42  ;;  %v504_v45 = vpop.f32.mrb[1].mxu1 }
 0x20b   :  { %v589_v46 = vmul.f32 %v1162_v42, %v504_v45 }
 0x20c   :  { %v613_v47 = vadd.f32 %v1167_v61, %v590_v44 }
 0x20d   :  { %v612_v48 = vadd.f32 %v1167_v61, %v589_v46  ;;  %v821_v49 = vpop.f32.mrb[2].mxu1 }
 0x20e   :  { %629 = vst [vmem:[#allocation8 + $0x8] sm:$0xff] %v613_v47  ;;  %v592_v6 = vmul.f32 %v821_v49, %v1162_v42  ;;  %v514_v10 = vpop.f32.mrb[3].mxu1 }
 0x20f   :  { %628 = vst [vmem:[#allocation8] sm:$0xff] %v612_v48  ;;  %v591_v50 = vmul.f32 %v1162_v42, %v514_v10 }
 0x210   :  { %v615_v51 = vadd.f32 %v1167_v61, %v592_v6 }
 0x211   :  { %v614_v52 = vadd.f32 %v1167_v61, %v591_v50  ;;  %v824_v53 = vpop.f32.mrb[4].mxu1 }
 0x212   :  { %631 = vst [vmem:[#allocation8 + $0x18] sm:$0xff] %v615_v51  ;;  %v594_v54 = vmul.f32 %v824_v53, %v1162_v42  ;;  %v524_v55 = vpop.f32.mrb[5].mxu1 }
 0x213   :  { %630 = vst [vmem:[#allocation8 + $0x10] sm:$0xff] %v614_v52  ;;  %v593_v56 = vmul.f32 %v1162_v42, %v524_v55 }
 0x214   :  { %v617_v57 = vadd.f32 %v1167_v61, %v594_v54 }
 0x215   :  { %v616_v58 = vadd.f32 %v1167_v61, %v593_v56  ;;  %v827_v59 = vpop.f32.mrb[6].mxu1 }
 0x216   :  { %633 = vst [vmem:[#allocation8 + $0x28] sm:$0xff] %v617_v57  ;;  %v596_v60 = vmul.f32 %v827_v59, %v1162_v42  ;;  %v534_v62 = vpop.f32.mrb[7].mxu1 }
 0x217   :  { %632 = vst [vmem:[#allocation8 + $0x20] sm:$0xff] %v616_v58  ;;  %v595_v63 = vmul.f32 %v1162_v42, %v534_v62 }
 0x218   :  { %v619_v0 = vadd.f32 %v1167_v61, %v596_v60 }
 0x219   :  { %v618_v1 = vadd.f32 %v1167_v61, %v595_v63  ;;  %v830_v2 = vpop.f32.mrb[8].mxu1 }
 0x21a   :  { %635 = vst [vmem:[#allocation8 + $0x38] sm:$0xff] %v619_v0  ;;  %v598_v3 = vmul.f32 %v830_v2, %v1162_v42  ;;  %v544_v4 = vpop.f32.mrb[9].mxu1 }
 0x21b   :  { %634 = vst [vmem:[#allocation8 + $0x30] sm:$0xff] %v618_v1  ;;  %v597_v5 = vmul.f32 %v1162_v42, %v544_v4 }
 0x21c   :  { %v621_v7 = vadd.f32 %v1167_v61, %v598_v3 }
 0x21d   :  { %v620_v8 = vadd.f32 %v1167_v61, %v597_v5  ;;  %v833_v9 = vpop.f32.mrb[10].mxu1 }
 0x21e   :  { %637 = vst [vmem:[#allocation8 + $0x48] sm:$0xff] %v621_v7  ;;  %v600_v12 = vmul.f32 %v833_v9, %v1162_v42  ;;  %v554_v14 = vpop.f32.mrb[11].mxu1 }
 0x21f   :  { %636 = vst [vmem:[#allocation8 + $0x40] sm:$0xff] %v620_v8  ;;  %v599_v15 = vmul.f32 %v1162_v42, %v554_v14 }
 0x220   :  { %v623_v16 = vadd.f32 %v1167_v61, %v600_v12 }
 0x221   :  { %v622_v17 = vadd.f32 %v1167_v61, %v599_v15  ;;  %v836_v18 = vpop.f32.mrb[12].mxu1 }
 0x222   :  { %639 = vst [vmem:[#allocation8 + $0x58] sm:$0xff] %v623_v16  ;;  %v602_v19 = vmul.f32 %v836_v18, %v1162_v42  ;;  %v564_v20 = vpop.f32.mrb[13].mxu1 }
 0x223   :  { %638 = vst [vmem:[#allocation8 + $0x50] sm:$0xff] %v622_v17  ;;  %v601_v21 = vmul.f32 %v1162_v42, %v564_v20 }
 0x224   :  { %v625_v22 = vadd.f32 %v1167_v61, %v602_v19 }
 0x225   :  { %v624_v23 = vadd.f32 %v1167_v61, %v601_v21  ;;  %v839_v24 = vpop.f32.mrb[14].mxu1 }
 0x226   :  { %641 = vst [vmem:[#allocation8 + $0x68] sm:$0xff] %v625_v22  ;;  %v604_v25 = vmul.f32 %v839_v24, %v1162_v42  ;;  %v574_v26 = vpop.f32.mrb[15].mxu1 }
 0x227   :  { %640 = vst [vmem:[#allocation8 + $0x60] sm:$0xff] %v624_v23  ;;  %v603_v27 = vmul.f32 %v1162_v42, %v574_v26 }
 0x228   :  { %v627_v28 = vadd.f32 %v1167_v61, %v604_v25 }
 0x229   :  { %v626_v29 = vadd.f32 %v1167_v61, %v603_v27 }
 0x22a   :  { %643 = vst [vmem:[#allocation8 + $0x78] sm:$0xff] %v627_v28 }
 0x22b   :  { %642 = vst [vmem:[#allocation8 + $0x70] sm:$0xff] %v626_v29 }
 0x22c   :  { %991 = shalt.err (!%p988_p0)
}
 0x22d   :  { %s992_s24 = scalar_lea.hbm %s1223_s7, 2048 }
 0x22e   :  { %p993_p1 = scmp.ne.s32.totalorder %s1223_s7, %s992_s24  ;;  %p996_p2 = scmp.lt.u32.totalorder %s992_s24, %s1223_s7 }
 0x230   :  { %p998_p3 = pnand %p996_p2, %p993_p1 }
 0x232   :  { %1001 = shalt.err (!%p998_p3)
}
 0x233   :  { %655 = dma.vmem_to_hbm [thread:$0]  %s650_s6, 2048, %s1223_s7, [#allocation4], %s1010_s13, %s1010_s13, %s1011_s14  }
 0x234   :  { %1006 = dma.done.wait [#allocation4], 2048  }
 0x235   :  { %1007 = vsyncadd [#allocation4], 4294965248 }
 0x236   :  { %659 = vsyncpa [#allocation3], 1 }
 0x237   :  { %660 = vsyncpa [#allocation6], 1 }
 0x238   :  { %661 = vsyncpa [#allocation4], 1 }

</bundles_post_ra>
